<compile_context>
chip_gen: v5e
topology: v5e:2x2
jax: 0.10.0
libtpu: 0.0.40
codegen_flags: <defaults>
</compile_context>

<pallas_src>
import functools

import jax
import jax.numpy as jnp
from jax.experimental import pallas as pl
from jax.experimental.pallas import tpu as pltpu


# ---------------------------------------------------------------------------
# Kernel
# ---------------------------------------------------------------------------

def _head_kernel(w_ref, b_ref, x_ref, o_ref, *, n_b):
    """1x1-conv head on the MXU.

    w_ref: (c_in, c_out)          VMEM, resident, activation dtype
    b_ref: (c_out, 1)             VMEM, resident, f32
    x_ref: (n_b, c_in, tile_hw)   VMEM block (lane-dense spatial axis)
    o_ref: (n_b, c_out, tile_hw)  VMEM block
    """
    w = w_ref[...]
    b = b_ref[...]
    for i in range(n_b):  # n_b is small & static (1..few): full unroll is fine
        acc = jax.lax.dot_general(
            w, x_ref[i],
            dimension_numbers=(((0,), (0,)), ((), ())),   # contract over c_in
            preferred_element_type=jnp.float32)           # -> (c_out, tile_hw)
        o_ref[i] = (acc + b).astype(o_ref.dtype)


# ---------------------------------------------------------------------------
# Tiling heuristics
# ---------------------------------------------------------------------------

def _choose_tiling(n, c_in, c_out, hw, itemsize, *,
                   max_block_bytes=8 << 20, min_grid_steps=2):
    """Pick (n_b, tile_hw): batch elements per step + spatial (lane) tile."""
    cdiv = lambda a, b: -(-a // b)

    def n_steps(nb, thw):
        return cdiv(n, nb) * cdiv(hw, thw)

    per_lane = (c_in + c_out) * max(itemsize, 2)
    max_lanes = max(max_block_bytes // per_lane, 128)

    if hw <= max_lanes:
        tile_hw = hw                         # full extent: one contiguous burst
    else:
        tile_hw = max((max_lanes // 128) * 128, 128)
        # Prefer a tile that divides hw -> only full, unmasked vst blocks.
        t = tile_hw
        while t > max(tile_hw // 2, 128) and hw % t != 0:
            t -= 128
        if hw % t == 0:
            tile_hw = t

    # Merge several small images per grid step (amortizes per-step overhead and
    # lengthens DMAs) but never drop below `min_grid_steps` total steps, so the
    # v7x megacore (2 TCs) always has work to split.
    n_b = 1
    while (2 * n_b <= n
           and 2 * n_b * (c_in + c_out) * tile_hw * itemsize <= max_block_bytes
           and n_steps(2 * n_b, tile_hw) >= min_grid_steps):
        n_b *= 2

    # If the grid collapsed to a single step (e.g. N=1, small image), split the
    # spatial axis instead.
    if n_steps(n_b, tile_hw) < min_grid_steps and tile_hw > 128:
        half = cdiv(tile_hw, 2)
        tile_hw = max(cdiv(half, 128) * 128, 128)

    return n_b, tile_hw


# ---------------------------------------------------------------------------
# Wrapper
# ---------------------------------------------------------------------------

def basic_head_forward(x_nchw, weight, bias):
    """x_nchw: [N, C_in, H, W]; weight: [C_in, C_out]; bias: [C_out].

    Returns [N, C_out, H, W] (same semantics as a 1x1 Conv2d head).
    Accepts f32 or bf16 activations; accumulation is always f32.
    """
    n, c_in, h, w = x_nchw.shape
    c_in_w, c_out = weight.shape
    assert c_in_w == c_in
    hw = h * w

    # Row-major merge of (H, W) -> H*W is layout-free: no transpose, no copy.
    x3 = x_nchw.reshape(n, c_in, hw)

    itemsize = jnp.dtype(x_nchw.dtype).itemsize
    n_b, tile_hw = _choose_tiling(n, c_in, c_out, hw, itemsize)
    grid = (pl.cdiv(n, n_b), pl.cdiv(hw, tile_hw))

    # Spatial axis is the lane dimension -> unmasked, full-width vector stores.
    x_spec = pl.BlockSpec((n_b, c_in, tile_hw), lambda b, s: (b, 0, s))
    o_spec = pl.BlockSpec((n_b, c_out, tile_hw), lambda b, s: (b, 0, s))

    # Weight/bias stay resident in VMEM for the whole grid (tiny arrays).
    # Weight is cast to the activation dtype (bf16 is MXU-native); bias stays
    # f32 and is added to the f32 accumulator.
    w_arg = weight.astype(x_nchw.dtype)
    b_arg = bias.astype(jnp.float32).reshape(c_out, 1)
    w_spec = pl.BlockSpec(memory_space=pltpu.MemorySpace.VMEM)
    b_spec = pl.BlockSpec(memory_space=pltpu.MemorySpace.VMEM)

    # VMEM budget: double-buffered x/out blocks + resident weight/bias + slack,
    # capped at 32 MiB (v7x has only 64 MiB physical VMEM per TC).
    x_block_bytes = n_b * c_in * tile_hw * itemsize
    o_block_bytes = n_b * c_out * tile_hw * itemsize
    need = 2 * (x_block_bytes + o_block_bytes) + w_arg.size * itemsize + c_out * 4
    vmem_limit = int(min(max(need + (2 << 20), 8 << 20), 32 << 20))

    kernel = functools.partial(_head_kernel, n_b=n_b)

    out3 = pl.pallas_call(
        kernel,
        out_shape=jax.ShapeDtypeStruct((n, c_out, hw), x_nchw.dtype),
        grid_spec=pltpu.PrefetchScalarGridSpec(
            num_scalar_prefetch=0,
            grid=grid,
            in_specs=[w_spec, b_spec, x_spec],
            out_specs=o_spec,
        ),
        compiler_params=pltpu.CompilerParams(
            dimension_semantics=("parallel", "parallel"),
            vmem_limit_bytes=vmem_limit,
        ),
    )(w_arg, b_arg, x3)

    # Free reshape back to NCHW; no transpose needed.
    return out3.reshape(n, c_out, h, w)


# ---------------------------------------------------------------------------
# Demo / correctness check
# ---------------------------------------------------------------------------

if __name__ == "__main__":
    key = jax.random.PRNGKey(0)
    k_x, k_w, k_b = jax.random.split(key, 3)

    N, C_IN, H, W = 2, 4, 16, 16
    C_OUT = 8

    x = jax.random.normal(k_x, (N, C_IN, H, W), dtype=jnp.float32)
    weight = jax.random.normal(k_w, (C_IN, C_OUT), dtype=jnp.float32) * 0.1
    bias = jax.random.normal(k_b, (C_OUT,), dtype=jnp.float32) * 0.01

    # f32 path. Tolerance allows for reduced-precision MXU passes on f32
    # matmuls on some generations (contraction dim is only 4, so any such
    # error is tiny relative to the output magnitude).
    out = basic_head_forward(x, weight, bias)
    jax.block_until_ready(out)

    ref = jnp.einsum("nchw,cd->ndhw", x, weight,
                     precision=jax.lax.Precision.HIGHEST) \
        + bias[None, :, None, None]
    assert out.shape == (N, C_OUT, H, W)
    assert jnp.allclose(out, ref, atol=2e-3, rtol=2e-3), "f32 mismatch vs reference"

    # bf16 I/O path (bandwidth optimization): bf16 activations + bf16 weight on
    # the MXU, f32 accumulation inside, bf16 stores.
    x_bf16 = x.astype(jnp.bfloat16)
    out_bf16 = basic_head_forward(x_bf16, weight, bias)
    jax.block_until_ready(out_bf16)
    ref_bf16 = jnp.einsum("nchw,cd->ndhw", x_bf16.astype(jnp.float32),
                          weight.astype(jnp.bfloat16).astype(jnp.float32),
                          precision=jax.lax.Precision.HIGHEST) \
        + bias[None, :, None, None]
    assert out_bf16.dtype == jnp.bfloat16
    assert jnp.allclose(out_bf16.astype(jnp.float32), ref_bf16,
                        atol=2e-2, rtol=2e-2), "bf16 mismatch vs reference"

    print("KERNEL_OK")
</pallas_src>

<mosaic_0001>
module attributes {stable_mosaic.version = 11 : i64} {
  func.func @_head_kernel(%arg0: i32, %arg1: i32, %arg2: memref<4x8xf32, #tpu.memory_space<vmem>>, %arg3: memref<8x1xf32, #tpu.memory_space<vmem>>, %arg4: memref<1x4x256xf32, #tpu.memory_space<vmem>>, %arg5: memref<1x8x256xf32, #tpu.memory_space<vmem>>) attributes {dimension_semantics = [#tpu.dimension_semantics<parallel>, #tpu.dimension_semantics<parallel>], iteration_bounds = array<i64: 2, 1>, scalar_prefetch = 0 : i64, scratch_operands = 0 : i64, tpu.core_type = #tpu.core_type<tc>, window_params = [{pipeline_mode = #tpu.pipeline_mode<synchronous>, transform_indices = @transform_0, window_bounds = array<i64: 4, 8>}, {pipeline_mode = #tpu.pipeline_mode<synchronous>, transform_indices = @transform_1, window_bounds = array<i64: 8, 1>}, {transform_indices = @transform_2, window_bounds = array<i64: 1, 4, 256>}, {transform_indices = @transform_3, window_bounds = array<i64: 1, 8, 256>}]} {
    %c0 = arith.constant 0 : index
    %c0_0 = arith.constant 0 : index
    %0 = vector.load %arg2[%c0, %c0_0] : memref<4x8xf32, #tpu.memory_space<vmem>>, vector<4x8xf32>
    %c0_1 = arith.constant 0 : index
    %c0_2 = arith.constant 0 : index
    %1 = vector.load %arg3[%c0_1, %c0_2] : memref<8x1xf32, #tpu.memory_space<vmem>>, vector<8x1xf32>
    %c0_3 = arith.constant 0 : index
    %c0_4 = arith.constant 0 : index
    %c0_5 = arith.constant 0 : index
    %2 = vector.load %arg4[%c0_3, %c0_4, %c0_5] : memref<1x4x256xf32, #tpu.memory_space<vmem>>, vector<1x4x256xf32>
    %3 = vector.shape_cast %2 : vector<1x4x256xf32> to vector<4x256xf32>
    %cst = arith.constant dense<0.000000e+00> : vector<8x256xf32>
    %4 = tpu.matmul %0, %3, %cst {dimension_numbers = #tpu.dot_dimension_numbers<[0], [0], [1], [1], [0, 1, 1, 1], [], []>} : vector<4x8xf32>, vector<4x256xf32>, vector<8x256xf32> -> vector<8x256xf32>
    %5 = vector.broadcast %1 : vector<8x1xf32> to vector<8x256xf32>
    %6 = arith.addf %4, %5 : vector<8x256xf32>
    %c0_6 = arith.constant 0 : index
    %c0_7 = arith.constant 0 : index
    %c0_8 = arith.constant 0 : index
    %7 = vector.load %arg5[%c0_6, %c0_7, %c0_8] : memref<1x8x256xf32, #tpu.memory_space<vmem>>, vector<1x8x256xf32>
    %8 = vector.shape_cast %7 : vector<1x8x256xf32> to vector<8x256xf32>
    %9 = vector.shape_cast %6 : vector<8x256xf32> to vector<1x8x256xf32>
    tpu.vector_store %arg5[%c0_6, %c0_7, %c0_8], %9 {strides = array<i32>} : memref<1x8x256xf32, #tpu.memory_space<vmem>>, vector<1x8x256xf32>,
    return
  }
  func.func @transform_0(%arg0: i32, %arg1: i32) -> (i32, i32) {
    %c0_i32 = arith.constant 0 : i32
    %c0_i32_0 = arith.constant 0 : i32
    %c0_i32_1 = arith.constant 0 : i32
    return %c0_i32, %c0_i32_0 : i32, i32
  }
  func.func @transform_1(%arg0: i32, %arg1: i32) -> (i32, i32) {
    %c0_i32 = arith.constant 0 : i32
    %c0_i32_0 = arith.constant 0 : i32
    %c0_i32_1 = arith.constant 0 : i32
    return %c0_i32, %c0_i32_0 : i32, i32
  }
  func.func @transform_2(%arg0: i32, %arg1: i32) -> (i32, i32, i32) {
    %c0_i32 = arith.constant 0 : i32
    %c0_i32_0 = arith.constant 0 : i32
    return %arg0, %c0_i32, %arg1 : i32, i32, i32
  }
  func.func @transform_3(%arg0: i32, %arg1: i32) -> (i32, i32, i32) {
    %c0_i32 = arith.constant 0 : i32
    %c0_i32_0 = arith.constant 0 : i32
    return %arg0, %c0_i32, %arg1 : i32, i32, i32
  }
}

</mosaic_0001>

<bundles_post_ra>
// kernel: tpu_custom_call.1
= control target key start
LH: loop header
LB: loop body
LE: loop exit
PB: predicated region body
PF: predicated region fallthrough
CT: control target
= control target key end

     0   :  { %8 = vsyncpa [#allocation3], 0  ;;  %s755_s0 = inlined_call_operand.vmem [shape: f32[4,8], index: 0, kind: input, shape index: {}]   ;;  %s756_s1 = inlined_call_operand.vmem [shape: f32[8,1], index: 1, kind: input, shape index: {}]   ;;  %s757_s2 = inlined_call_operand.hbm [shape: f32[2,4,256], index: 2, kind: input, shape index: {}]   ;;  %s758_s3 = inlined_call_operand.hbm [shape: f32[2,8,256], index: 3, kind: output, shape index: {}]  }
   0x1   :  { %10 = vsyncpa [#allocation3 + $0x1], 0 }
   0x2   :  { %11 = vsyncpa [#allocation4], 0 }
   0x3   :  { %13 = vsyncpa [#allocation4 + $0x1], 0  ;;  %s628_s12 = smov 0   ;;  %s630_s13 = smov 0  }
   0x4   :  { %s632_s14 = smov 0   ;;  %s634_s15 = smov 0  }
   0x5   :  { %s636_s16 = smov 0   ;;  %s638_s17 = smov 0  }
   0x6 LB: > { %s407_s18 = sadd.s32 4294967295, %s605_s17   ;;  %s408_s19 = sadd.s32 4294967294, %s605_s17   ;;  %s605_s17 = sphi %s638_s17, %s19_s17   ;;  %s601_s16 = sphi %s636_s16, %s767_s16   ;;  %s597_s15 = sphi %s634_s15, %s766_s15   ;;  %s593_s14 = sphi %s632_s14, %s765_s14   ;;  %s589_s13 = sphi %s630_s13, %s764_s13   ;;  %s585_s12 = sphi %s628_s12, %s763_s12  }
   0x7   : > { %s31_s20 = sadd.s32 1, %s601_s16  ;;  %s82_s21 = sadd.s32 1, %s593_s14 }
   0x8   : > { %p33_p0 = scmp.ge.s32.totalorder %s31_s20, 2  ;;  %p89_p1 = scmp.ne.s32.totalorder %s593_s14, %s589_s13 }
   0x9   : > { %p90_p2 = scmp.eq.s32.totalorder %s605_s17, 0  ;;  %p95_p3 = scmp.ne.s32.totalorder %s589_s13, %s585_s12 }
   0xa   : > { %s769_s20 = smov (%p33_p0, %s31_s20), 0  ;;  %p96_p5 = scmp.eq.s32.totalorder %s407_s18, 0 }
   0xb   : > { %p669_p4 = por %p90_p2, %p89_p1  ;;  %s77_s23 = ssub.s32 %s601_s16, %s769_s20 }
   0xc   : > { %p121_p6 = scmp.eq.s32.totalorder %s407_s18, 1  ;;  %p80_p7 = scmp.eq.s32.totalorder %s77_s23, 0 }
   0xd   : > { %p675_p8 = por %p96_p5, %p95_p3  ;;  %p127_p10 = scmp.eq.s32.totalorder %s408_s19, 1 }
   0xe   : > { %p679_p9 = por %p121_p6, %p89_p1  ;;  %p410_p12 = scmp.ge.s32.totalorder %s605_s17, 2 }
   0xf   : > { %s684_s26 = scalar_select %p80_p7, %s593_s14, %s82_s21  }
  0x10   : > { %p686_p11 = por %p127_p10, %p95_p3  ;;  %p440_p13 = scmp.lt.s32.totalorder %s605_s17, 2 }
  0x11   : > { %s153_s28 = sand.u32 1, %s593_s14   ;;  %s426_s30 = sshll.u32 %s601_s16, 3 }
  0x12   : > { %s411_s29 = sshll.u32 %s153_s28, 3  ;;  %s164_s6 = scalar_lea.hbm %s757_s2, %s426_s30 }
  0x13   : > { %s157_s7 = scalar_lea.vmem [#allocation2], %s411_s29  ;;  %s166_s9 = sshll.u32 %s164_s6, 4  ;;  %s167_s9 = int_to_ptr.hbm [resolvable:$true] %s166_s9 }
  0x14   : > { %s168_s8 = sshll.u32 %s157_s7, 4  ;;  %p433_p0 = pnand %p440_p13, %p669_p4  ;;  %s169_s8 = int_to_ptr.vmem [resolvable:$true] %s168_s8 }
  0x15   : > { %p414_p1 = scmp.ge.s32.totalorder %s605_s17, 1  ;;  %p173_p2 = scmp.lt.s32.totalorder %s605_s17, 3 }
  0x16   : > { %s154_s10 = scalar_lea.sflag [#allocation3], %s153_s28 }
  0x17   : > { %435 = dma.hbm_to_vmem [thread:$0]  (!%p433_p0), %s167_s9, 128, %s169_s8, %s154_s10  }
  0x18   : > { %p174_p3 = pnand %p414_p1, %p173_p2 }
  0x19   : > { %s702_s11 = sand.u32 (!%p174_p3), 1, %s589_s13  }
  0x1a   : > { %177 = sbr.rel (%p174_p3) target bundleno = 330 (0x14a), region = 32  ;;  %s415_s18 = sshll.u32 (!%p174_p3), %s702_s11, 3 }
  0x1b   : > { %s180_s19 = scalar_lea.sflag (!%p174_p3), [#allocation3], %s702_s11  ;;  %s183_s21 = scalar_lea.vmem (!%p174_p3), [#allocation2], %s415_s18 }
  0x1f   : > { %576 = dma.done.wait (%p675_p8), %s180_s19, 128  }
  0x20   : > { %578 = vsyncadd (%p675_p8), %s180_s19, 4294967168  ;;  %v211_v0 = vld [vmem:[%s183_s21] sm:$0xff]  ;;  %v209_v1 = vld [vmem:[%s755_s0] sm:$0xf]  ;;  %vm257_vm0 = vcmask 1043456   ;;  %v607_v5 = vmov 0  }
  0x21   : > { %250 = vst [vmem:[#allocation1] ss:$2 sm:$0xff] %v211_v0  ;;  %217 = vxpose.xlu0.b32.start.end [1/1] (short) (narrow) %v209_v1, 8  ;;  %v210_v4 = vld [vmem:[%s756_s1] sm:$0xff]  ;;  %vm253_vm1 = vcmask 31744   ;;  %s416_s24 = sshll.u32 %s702_s11, 4 }
  0x22   : > { %s427_s30 = sshll.u32 %s597_s15, 4  ;;  %s206_s7 = scalar_lea.vmem [#allocation5], %s416_s24 }
  0x23   : > { %s318_s6 = scalar_lea.hbm %s758_s3, %s427_s30  ;;  %s320_s8 = sshll.u32 %s206_s7, 4  ;;  %s321_s8 = int_to_ptr.vmem [resolvable:$true] %s320_s8 }
  0x24   : > { %s322_s9 = sshll.u32 %s318_s6, 4  ;;  %s305_s10 = scalar_lea.sflag [#allocation4], %s702_s11  ;;  %s323_s9 = int_to_ptr.hbm [resolvable:$true] %s322_s9 }
  0x25   : > { %s537_s18 = sshra.s32 %s323_s9, 4  ;;  %s543_s22 = scalar_lea.hbm %s758_s3, 32  ;;  %s538_s18 = int_to_ptr.hbm [resolvable:$true] %s537_s18 }
  0x26   : > { %s539_s15 = scalar_lea.hbm %s538_s18, 16  ;;  %p544_p7 = scmp.lt.s32.totalorder %s538_s18, %s758_s3 }
  0x27   : > { %p540_p4 = scmp.ne.s32.totalorder %s538_s18, %s539_s15  ;;  %p545_p8 = scmp.lt.s32.totalorder %s543_s22, %s539_s15 }
  0x28   : > { %v251_v2 = vld.sshfl [vmem:[#allocation1] sm:$0xff pattern:$0x75316420]  ;;  %v252_v3 = vld.sshfl [vmem:[#allocation1 + $0x8] sm:$0xff pattern:$0x75316420] }
  0x29   : > { %417 = vmatpush.msk.msra.mxu0 %vm257_vm0, %v251_v2  ;;  %419 = vmatpush.msk.msra.mxu1 %vm257_vm0, %v252_v3  ;;  %p541_p5 = pnand %p540_p4, %p679_p9  ;;  %p546_p10 = por %p545_p8, %p544_p7 }
  0x2b   : > { %p542_p6 = pneg %p541_p5 }
  0x2d   : > { %p547_p13 = pnand %p546_p10, %p542_p6 }
  0x88   : > { %492 = vset.pattern.permute.xlu0 %v607_v5 }
  0x8f   : > { %214 = vperm.xlu0 %492, %v210_v4  }
  0xc5   : > { %v233_v6 = vpop.trf.xlu0 }
  0xc6   : > { %418 = vmatmul.msk.f32.vlgmr.msra.gmra.mxu0 %vm253_vm1, %v233_v6  ;;  %420 = vmatmul.msk.f32.vlgmr.msra.gmra.mxu1 %vm253_vm1, %v233_v6 }
 0x101   : > { %v215_v7 = vpop.permute.xlu0 %214 }
 0x143   : > { %v279_v8 = vpop.f32.mrf.mxu0  ;;  %v299_v9 = vpop.f32.mrf.mxu1 }
 0x144   : > { %v280_v10 = vadd.f32 %v279_v8, %v215_v7  ;;  %v300_v11 = vadd.f32 %v299_v9, %v215_v7 }
 0x146   : > { %302 = vst [vmem:[%s206_s7] sm:$0xff] %v280_v10 }
 0x147   : > { %303 = vst [vmem:[%s206_s7 + $0x8] sm:$0xff] %v300_v11 }
 0x148   : > { %550 = shalt.err (!%p547_p13)
}
 0x149   : > { %430 = dma.vmem_to_hbm [thread:$0]  (%p679_p9), %s321_s8, 256, %s323_s9, %s305_s10  }
 0x14a PF: > { %s334_s11 = sand.u32 1, %s585_s12   ;;  %p437_p0 = pnand %p410_p12, %p686_p11 }
 0x14b   : > { %s335_s29 = scalar_lea.sflag [#allocation4], %s334_s11 }
 0x14c   : > { %p438_p1 = pneg %p437_p0 }
 0x14e   : > { %580 = dma.done.wait (%p438_p1), %s335_s29, 256  }
 0x14f   : > { %582 = vsyncadd (%p438_p1), %s335_s29, 4294967040  ;;  %s19_s17 = sadd.s32 1, %s605_s17   ;;  %s763_s12 = smov %s589_s13 }
 0x150   : > { %p16_p2 = scmp.ge.s32.totalorder %s19_s17, 4   ;;  %s764_s13 = smov %s593_s14 }
 0x151   : > { %s765_s14 = smov %s684_s26  ;;  %s766_s15 = smov %s601_s16 }
 0x152   : > { %s767_s16 = smov %s769_s20  ;;  %18 = sbr.rel (!%p16_p2) target bundleno = 6 (0x6), region = 77 }
 0x157   :  { %341 = vsyncpa [#allocation3], 1 }
 0x158   :  { %343 = vsyncpa [#allocation3 + $0x1], 1 }
 0x159   :  { %344 = vsyncpa [#allocation4], 1 }
 0x15a   :  { %346 = vsyncpa [#allocation4 + $0x1], 1 }

</bundles_post_ra>
